<compile_context>
chip_gen: v7x
topology: tpu7x:2x2x1
jax: 0.10.0
libtpu: 0.0.40
codegen_flags: <defaults>
</compile_context>

<pallas_src>
import jax
import jax.numpy as jnp
from jax.experimental import pallas as pl
from jax.experimental.pallas import tpu as pltpu


def reinforce_kernel(x_ref, w1_ref, b1_ref, w2_ref, o_ref):
    # x  : (B, S)   input batch
    # w1 : (S, H)   fc1 weight (math layout, x @ w1)
    # b1 : (1, H)   fc1 bias
    # w2 : (H, A)   fc2 weight (math layout, h @ w2); b2 omitted (cancels
    #               under softmax over dim=0)
    x = x_ref[...]
    w1 = w1_ref[...]
    b1 = b1_ref[...]

    # fc1 (+ bias) as an unrolled VPU broadcast-FMA over the tiny K dim
    # (K = S = 4); accumulator starts at the sublane-broadcast bias, avoiding
    # an MXU FIFO round-trip for a <1%-utilized systolic matmul.
    k_dim = x.shape[1]
    h = b1 + x[:, 0:1] * w1[0:1, :]                 # (B, H) via broadcast
    for k in range(1, k_dim):                       # static unroll
        h = h + x[:, k:k+1] * w1[k:k+1, :]
    h = jnp.maximum(h, 0.0)                         # relu, (B, H) f32

    # fc2 as one MXU matmul -> (B, A) logits in a single vreg-sized block.
    logits = jnp.dot(h, w2_ref[...], preferred_element_type=jnp.float32)

    # softmax over dim=0 (batch axis), whole block at once, single store.
    m = jnp.max(logits, axis=0, keepdims=True)      # (1, A) sublane reduce
    e = jnp.exp(logits - m)                         # (B, A)
    denom = jnp.sum(e, axis=0, keepdims=True)       # (1, A)
    o_ref[...] = e * pl.reciprocal(denom, approx=False)


@jax.jit
def reinforce_forward(x, w1, b1, w2):
    """x: (B, S); w1: (S, H); b1: (1, H); w2: (H, A).

    b2 is intentionally not an argument: softmax over dim=0 cancels any
    per-action-column constant, so it has zero effect on the output.
    """
    B = x.shape[0]
    A = w2.shape[-1]
    return pl.pallas_call(
        reinforce_kernel,
        out_shape=jax.ShapeDtypeStruct((B, A), jnp.float32),
        in_specs=[pl.BlockSpec(memory_space=pltpu.MemorySpace.VMEM)
                  for _ in range(4)],
        out_specs=pl.BlockSpec(memory_space=pltpu.MemorySpace.VMEM),
    )(x, w1, b1, w2)


if __name__ == "__main__":
    STATES, HIDDEN, ACTIONS, BATCH = 4, 512, 2, 8

    key = jax.random.PRNGKey(0)
    kx, k1, k2, k3, k4 = jax.random.split(key, 5)

    # Deterministic parameter init (PyTorch Linear-style uniform bounds).
    bound1 = 1.0 / (STATES ** 0.5)
    bound2 = 1.0 / (HIDDEN ** 0.5)
    w1 = jax.random.uniform(k1, (STATES, HIDDEN), jnp.float32, -bound1, bound1)
    b1 = jax.random.uniform(k2, (1, HIDDEN), jnp.float32, -bound1, bound1)
    w2 = jax.random.uniform(k3, (HIDDEN, ACTIONS), jnp.float32, -bound2, bound2)
    b2 = jax.random.uniform(k4, (1, ACTIONS), jnp.float32, -bound2, bound2)

    x = jax.random.normal(kx, (BATCH, STATES), jnp.float32)

    out = reinforce_forward(x, w1, b1, w2)
    out = jax.block_until_ready(out)

    # Pure-JAX reference of the full module semantics (b2 included here; it
    # cancels under softmax(dim=0)). HIGHEST precision so the MXU reference
    # matches the kernel's exact-f32 accumulation path.
    hp = jax.lax.Precision.HIGHEST
    h_ref = jnp.maximum(jnp.dot(x, w1, precision=hp) + b1, 0.0)
    logits_ref = jnp.dot(h_ref, w2, precision=hp) + b2
    ref = jax.nn.softmax(logits_ref, axis=0)   # dim=0, matching the module
    assert jnp.allclose(out, ref, atol=1e-5, rtol=1e-5), "mismatch vs reference"

    print("KERNEL_OK")
</pallas_src>

<mosaic_0001>
module attributes {stable_mosaic.version = 11 : i64} {
  func.func @reinforce_kernel(%arg0: memref<8x4xf32, #tpu.memory_space<vmem>>, %arg1: memref<4x512xf32, #tpu.memory_space<vmem>>, %arg2: memref<1x512xf32, #tpu.memory_space<vmem>>, %arg3: memref<512x2xf32, #tpu.memory_space<vmem>>, %arg4: memref<8x2xf32, #tpu.memory_space<vmem>>) attributes {dimension_semantics = [], scalar_prefetch = 0 : i64, scratch_operands = 0 : i64, tpu.core_type = #tpu.core_type<tc>} {
    %c0 = arith.constant 0 : index
    %c0_0 = arith.constant 0 : index
    %0 = vector.load %arg0[%c0, %c0_0] : memref<8x4xf32, #tpu.memory_space<vmem>>, vector<8x4xf32>
    %c0_1 = arith.constant 0 : index
    %c0_2 = arith.constant 0 : index
    %1 = vector.load %arg1[%c0_1, %c0_2] : memref<4x512xf32, #tpu.memory_space<vmem>>, vector<4x512xf32>
    %c0_3 = arith.constant 0 : index
    %c0_4 = arith.constant 0 : index
    %2 = vector.load %arg2[%c0_3, %c0_4] : memref<1x512xf32, #tpu.memory_space<vmem>>, vector<1x512xf32>
    %3 = vector.extract_strided_slice %0 {offsets = [0, 0], sizes = [8, 1], strides = [1, 1]} : vector<8x4xf32> to vector<8x1xf32>
    %4 = vector.extract_strided_slice %1 {offsets = [0, 0], sizes = [1, 512], strides = [1, 1]} : vector<4x512xf32> to vector<1x512xf32>
    %5 = vector.broadcast %3 : vector<8x1xf32> to vector<8x512xf32>
    %6 = vector.broadcast %4 : vector<1x512xf32> to vector<8x512xf32>
    %7 = arith.mulf %5, %6 : vector<8x512xf32>
    %8 = vector.broadcast %2 : vector<1x512xf32> to vector<8x512xf32>
    %9 = arith.addf %8, %7 : vector<8x512xf32>
    %10 = vector.extract_strided_slice %0 {offsets = [0, 1], sizes = [8, 1], strides = [1, 1]} : vector<8x4xf32> to vector<8x1xf32>
    %11 = vector.extract_strided_slice %1 {offsets = [1, 0], sizes = [1, 512], strides = [1, 1]} : vector<4x512xf32> to vector<1x512xf32>
    %12 = vector.broadcast %10 : vector<8x1xf32> to vector<8x512xf32>
    %13 = vector.broadcast %11 : vector<1x512xf32> to vector<8x512xf32>
    %14 = arith.mulf %12, %13 : vector<8x512xf32>
    %15 = arith.addf %9, %14 : vector<8x512xf32>
    %16 = vector.extract_strided_slice %0 {offsets = [0, 2], sizes = [8, 1], strides = [1, 1]} : vector<8x4xf32> to vector<8x1xf32>
    %17 = vector.extract_strided_slice %1 {offsets = [2, 0], sizes = [1, 512], strides = [1, 1]} : vector<4x512xf32> to vector<1x512xf32>
    %18 = vector.broadcast %16 : vector<8x1xf32> to vector<8x512xf32>
    %19 = vector.broadcast %17 : vector<1x512xf32> to vector<8x512xf32>
    %20 = arith.mulf %18, %19 : vector<8x512xf32>
    %21 = arith.addf %15, %20 : vector<8x512xf32>
    %22 = vector.extract_strided_slice %0 {offsets = [0, 3], sizes = [8, 1], strides = [1, 1]} : vector<8x4xf32> to vector<8x1xf32>
    %23 = vector.extract_strided_slice %1 {offsets = [3, 0], sizes = [1, 512], strides = [1, 1]} : vector<4x512xf32> to vector<1x512xf32>
    %24 = vector.broadcast %22 : vector<8x1xf32> to vector<8x512xf32>
    %25 = vector.broadcast %23 : vector<1x512xf32> to vector<8x512xf32>
    %26 = arith.mulf %24, %25 : vector<8x512xf32>
    %27 = arith.addf %21, %26 : vector<8x512xf32>
    %cst = arith.constant 0.000000e+00 : f32
    %28 = vector.broadcast %cst : f32 to vector<8x512xf32>
    %29 = arith.maximumf %27, %28 : vector<8x512xf32>
    %c0_5 = arith.constant 0 : index
    %c0_6 = arith.constant 0 : index
    %30 = vector.load %arg3[%c0_5, %c0_6] : memref<512x2xf32, #tpu.memory_space<vmem>>, vector<512x2xf32>
    %cst_7 = arith.constant dense<0.000000e+00> : vector<8x2xf32>
    %31 = tpu.matmul %29, %30, %cst_7 {dimension_numbers = #tpu.dot_dimension_numbers<[1], [0], [0], [1], [0, 0, 1, 1], [], []>} : vector<8x512xf32>, vector<512x2xf32>, vector<8x2xf32> -> vector<8x2xf32>
    %cst_8 = arith.constant dense<0xFF800000> : vector<2xf32>
    %32 = vector.multi_reduction <maximumf>, %31, %cst_8 [0] : vector<8x2xf32> to vector<2xf32>
    %33 = vector.shape_cast %32 : vector<2xf32> to vector<1x2xf32>
    %34 = vector.broadcast %33 : vector<1x2xf32> to vector<8x2xf32>
    %35 = arith.subf %31, %34 : vector<8x2xf32>
    %36 = math.exp %35 : vector<8x2xf32>
    %cst_9 = arith.constant dense<0.000000e+00> : vector<2xf32>
    %37 = vector.multi_reduction <add>, %36, %cst_9 [0] : vector<8x2xf32> to vector<2xf32>
    %38 = vector.shape_cast %37 : vector<2xf32> to vector<1x2xf32>
    %39 = tpu.reciprocal %38 : vector<1x2xf32> -> vector<1x2xf32>
    %40 = vector.broadcast %39 : vector<1x2xf32> to vector<8x2xf32>
    %41 = arith.mulf %36, %40 : vector<8x2xf32>
    %c0_10 = arith.constant 0 : index
    %c0_11 = arith.constant 0 : index
    %42 = vector.load %arg4[%c0_10, %c0_11] : memref<8x2xf32, #tpu.memory_space<vmem>>, vector<8x2xf32>
    tpu.vector_store %arg4[%c0_10, %c0_11], %41 {strides = array<i32>} : memref<8x2xf32, #tpu.memory_space<vmem>>, vector<8x2xf32>,
    return
  }
}

</mosaic_0001>

<bundles_post_ra>
// kernel: reinforce_forward.1
= control target key start
LH: loop header
LB: loop body
LE: loop exit
PB: predicated region body
PF: predicated region fallthrough
CT: control target
= control target key end

     0   :  { %v617_v0 = vmov 0   ;;  %v618_v2 = vmov 2   ;;  %v619_v22 = vmov 1   ;;  %v620_v23 = vmov 3   ;;  %s856_s0 = inlined_call_operand.vmem [shape: f32[8,4], index: 0, kind: input, shape index: {}]   ;;  %s857_s3 = inlined_call_operand.vmem [shape: f32[512,2], index: 3, kind: input, shape index: {}]   ;;  %s858_s1 = inlined_call_operand.vmem [shape: f32[4,512], index: 1, kind: input, shape index: {}]   ;;  %s859_s2 = inlined_call_operand.vmem [shape: f32[1,512], index: 2, kind: input, shape index: {}]   ;;  %s860_s4 = inlined_call_operand.vmem [shape: f32[8,2], index: 4, kind: output, shape index: {}]  }
   0x1   :  { %608 = vset.pattern.permute.xlu0 %v617_v0  ;;  %v17_v1 = vld [vmem:[%s856_s0] sm:$0xff]  ;;  %610 = vset.pattern.permute.xlu1 %v618_v2  ;;  %v258_v4 = vld [vmem:[%s857_s3 + $0x88] sm:$0xff]  ;;  %v259_v15 = vld [vmem:[%s857_s3 + $0x90] sm:$0xff]  ;;  %vm445_vm0 = vcmask 15360  }
   0x2   :  { %v257_v3 = vld [vmem:[%s857_s3 + $0x80] sm:$0xff]  ;;  %23 = vperm.xlu0 %608, %v17_v1   ;;  %142 = vperm.xlu1 %610, %v17_v1   ;;  %v290_v7 = vld [vmem:[%s857_s3 + $0x188] sm:$0xff]  ;;  %v260_v16 = vld [vmem:[%s857_s3 + $0x98] sm:$0xff] }
   0x3   :  { %v540_v5 = vpack.c.bf16 %v258_v4, %v257_v3  ;;  %v289_v6 = vld [vmem:[%s857_s3 + $0x180] sm:$0xff]  ;;  %v242_v10 = vld [vmem:[%s857_s3 + $0x8] sm:$0xff]  ;;  %v291_v17 = vld [vmem:[%s857_s3 + $0x190] sm:$0xff]  ;;  %v544_v18 = vpack.c.bf16 %v260_v16, %v259_v15 }
   0x4   :  { %v241_v8 = vld [vmem:[%s857_s3] sm:$0xff]  ;;  %v572_v9 = vpack.c.bf16 %v290_v7, %v289_v6  ;;  %v274_v12 = vld [vmem:[%s857_s3 + $0x108] sm:$0xff]  ;;  %v292_v19 = vld [vmem:[%s857_s3 + $0x198] sm:$0xff] }
   0x5   :  { %v273_v11 = vld [vmem:[%s857_s3 + $0x100] sm:$0xff]  ;;  %541 = vmatprep.subr.bf16.mxu0 %v540_v5  ;;  %v542_v13 = vpack.c.bf16 %v242_v10, %v241_v8  ;;  %v243_v20 = vld [vmem:[%s857_s3 + $0x10] sm:$0xff]  ;;  %v244_v21 = vld [vmem:[%s857_s3 + $0x18] sm:$0xff]  ;;  %v576_v24 = vpack.c.bf16 %v292_v19, %v291_v17 }
   0x6   :  { %v574_v14 = vpack.c.bf16 %v274_v12, %v273_v11  ;;  %573 = vmatprep.subr.bf16.mxu1 %v572_v9  ;;  %609 = vset.pattern.permute.xlu0 %v619_v22  ;;  %v275_v25 = vld [vmem:[%s857_s3 + $0x110] sm:$0xff]  ;;  %v276_v26 = vld [vmem:[%s857_s3 + $0x118] sm:$0xff]  ;;  %v261_v27 = vld [vmem:[%s857_s3 + $0xa0] sm:$0xff]  ;;  %v546_v31 = vpack.c.bf16 %v244_v21, %v243_v20 }
   0x7   :  { %611 = vset.pattern.permute.xlu1 %v620_v23  ;;  %94 = vperm.xlu0 %609, %v17_v1   ;;  %v262_v28 = vld [vmem:[%s857_s3 + $0xa8] sm:$0xff]  ;;  %v293_v29 = vld [vmem:[%s857_s3 + $0x1a0] sm:$0xff]  ;;  %v578_v32 = vpack.c.bf16 %v276_v26, %v275_v25  ;;  %v263_v39 = vld [vmem:[%s857_s3 + $0xb0] sm:$0xff] }
   0x8   :  { %190 = vperm.xlu1 %611, %v17_v1   ;;  %v294_v30 = vld [vmem:[%s857_s3 + $0x1a8] sm:$0xff]  ;;  %543 = vmatpush3.bf16.msra.mxu0 %v542_v13  ;;  %v245_v33 = vld [vmem:[%s857_s3 + $0x20] sm:$0xff]  ;;  %v548_v35 = vpack.c.bf16 %v262_v28, %v261_v27  ;;  %v264_v40 = vld [vmem:[%s857_s3 + $0xb8] sm:$0xff] }
   0x9   :  { %575 = vmatpush3.bf16.msra.mxu1 %v574_v14  ;;  %v246_v34 = vld [vmem:[%s857_s3 + $0x28] sm:$0xff]  ;;  %545 = vmatprep.subr.bf16.mxu0 %v544_v18  ;;  %v580_v36 = vpack.c.bf16 %v294_v30, %v293_v29  ;;  %v277_v37 = vld [vmem:[%s857_s3 + $0x120] sm:$0xff]  ;;  %v295_v41 = vld [vmem:[%s857_s3 + $0x1b0] sm:$0xff]  ;;  %v552_v47 = vpack.c.bf16 %v264_v40, %v263_v39 }
   0xa   :  { %577 = vmatprep.subr.bf16.mxu1 %v576_v24  ;;  %v278_v38 = vld [vmem:[%s857_s3 + $0x128] sm:$0xff]  ;;  %v296_v42 = vld [vmem:[%s857_s3 + $0x1b8] sm:$0xff]  ;;  %v550_v43 = vpack.c.bf16 %v246_v34, %v245_v33  ;;  %v247_v45 = vld [vmem:[%s857_s3 + $0x30] sm:$0xff] }
   0xb   :  { %612 = vset.pattern.permute.xlu0 %v620_v23  ;;  %v582_v44 = vpack.c.bf16 %v278_v38, %v277_v37  ;;  %v248_v46 = vld [vmem:[%s857_s3 + $0x38] sm:$0xff]  ;;  %v584_v48 = vpack.c.bf16 %v296_v42, %v295_v41  ;;  %v279_v49 = vld [vmem:[%s857_s3 + $0x130] sm:$0xff]  ;;  %v265_v51 = vld [vmem:[%s857_s3 + $0xc0] sm:$0xff]  ;;  %v28_v37 = vlaneseq }
   0xc   :  { %547 = vmatpush3.bf16.msra.mxu0 %v546_v31  ;;  %v280_v50 = vld [vmem:[%s857_s3 + $0x138] sm:$0xff]  ;;  %v266_v52 = vld [vmem:[%s857_s3 + $0xc8] sm:$0xff]  ;;  %v297_v53 = vld [vmem:[%s857_s3 + $0x1c0] sm:$0xff]  ;;  %v554_v55 = vpack.c.bf16 %v248_v46, %v247_v45 }
   0xd   :  { %579 = vmatpush3.bf16.msra.mxu1 %v578_v32  ;;  %549 = vmatprep.subr.bf16.mxu0 %v548_v35  ;;  %v298_v54 = vld [vmem:[%s857_s3 + $0x1c8] sm:$0xff]  ;;  %v586_v56 = vpack.c.bf16 %v280_v50, %v279_v49  ;;  %v249_v57 = vld [vmem:[%s857_s3 + $0x40] sm:$0xff]  ;;  %v556_v59 = vpack.c.bf16 %v266_v52, %v265_v51  ;;  %v267_v63 = vld [vmem:[%s857_s3 + $0xd0] sm:$0xff]  ;;  %v29_v38 = vshrl.u32 %v28_v37, 7 }
   0xe   :  { %581 = vmatprep.subr.bf16.mxu1 %v580_v36  ;;  %v250_v58 = vld [vmem:[%s857_s3 + $0x48] sm:$0xff]  ;;  %v588_v60 = vpack.c.bf16 %v298_v54, %v297_v53  ;;  %v281_v61 = vld [vmem:[%s857_s3 + $0x140] sm:$0xff]  ;;  %v268_v0 = vld [vmem:[%s857_s3 + $0xd8] sm:$0xff] }
   0xf   :  { %v282_v62 = vld [vmem:[%s857_s3 + $0x148] sm:$0xff]  ;;  %v299_v1 = vld [vmem:[%s857_s3 + $0x1d0] sm:$0xff]  ;;  %v300_v2 = vld [vmem:[%s857_s3 + $0x1d8] sm:$0xff]  ;;  %v558_v3 = vpack.c.bf16 %v250_v58, %v249_v57  ;;  %v560_v7 = vpack.c.bf16 %v268_v0, %v267_v63  ;;  %v30_v39 = vsub.s32 0, %v29_v38  ;;  %v34_v40 = vsub.s32 4, %v29_v38 }
  0x10   :  { %551 = vmatpush3.bf16.msra.mxu0 %v550_v43  ;;  %v590_v4 = vpack.c.bf16 %v282_v62, %v281_v61  ;;  %v251_v5 = vld [vmem:[%s857_s3 + $0x50] sm:$0xff]  ;;  %v252_v6 = vld [vmem:[%s857_s3 + $0x58] sm:$0xff]  ;;  %v592_v8 = vpack.c.bf16 %v300_v2, %v299_v1  ;;  %v269_v11 = vld [vmem:[%s857_s3 + $0xe0] sm:$0xff]  ;;  %v79_v43 = vsub.s32 2, %v29_v38  ;;  %v75_v52 = vsub.s32 1, %v29_v38 }
  0x11   :  { %583 = vmatpush3.bf16.msra.mxu1 %v582_v44  ;;  %553 = vmatprep.subr.bf16.mxu0 %v552_v47  ;;  %v283_v9 = vld [vmem:[%s857_s3 + $0x150] sm:$0xff]  ;;  %v284_v10 = vld [vmem:[%s857_s3 + $0x158] sm:$0xff]  ;;  %v270_v12 = vld [vmem:[%s857_s3 + $0xe8] sm:$0xff]  ;;  %v562_v15 = vpack.c.bf16 %v252_v6, %v251_v5  ;;  %v103_v53 = vsub.s32 5, %v29_v38  ;;  %v199_v57 = vsub.s32 7, %v29_v38 }
  0x12   :  { %585 = vmatprep.subr.bf16.mxu1 %v584_v48  ;;  %v301_v13 = vld [vmem:[%s857_s3 + $0x1e0] sm:$0xff]  ;;  %v302_v14 = vld [vmem:[%s857_s3 + $0x1e8] sm:$0xff]  ;;  %v594_v16 = vpack.c.bf16 %v284_v10, %v283_v9  ;;  %v564_v19 = vpack.c.bf16 %v270_v12, %v269_v11  ;;  %v271_v23 = vld [vmem:[%s857_s3 + $0xf0] sm:$0xff]  ;;  %v151_v48 = vsub.s32 6, %v29_v38 }
  0x13   :  { %v253_v17 = vld [vmem:[%s857_s3 + $0x60] sm:$0xff]  ;;  %v254_v18 = vld [vmem:[%s857_s3 + $0x68] sm:$0xff]  ;;  %v596_v20 = vpack.c.bf16 %v302_v14, %v301_v13  ;;  %v272_v24 = vld [vmem:[%s857_s3 + $0xf8] sm:$0xff] }
  0x14   :  { %555 = vmatpush3.bf16.msra.mxu0 %v554_v55  ;;  %v285_v21 = vld [vmem:[%s857_s3 + $0x160] sm:$0xff]  ;;  %v286_v22 = vld [vmem:[%s857_s3 + $0x168] sm:$0xff]  ;;  %v303_v25 = vld [vmem:[%s857_s3 + $0x1f0] sm:$0xff]  ;;  %v566_v27 = vpack.c.bf16 %v254_v18, %v253_v17  ;;  %v568_v30 = vpack.c.bf16 %v272_v24, %v271_v23 }
  0x15   :  { %587 = vmatpush3.bf16.msra.mxu1 %v586_v56  ;;  %557 = vmatprep.subr.bf16.mxu0 %v556_v59  ;;  %v304_v26 = vld [vmem:[%s857_s3 + $0x1f8] sm:$0xff]  ;;  %v598_v28 = vpack.c.bf16 %v286_v22, %v285_v21  ;;  %v255_v29 = vld [vmem:[%s857_s3 + $0x70] sm:$0xff]  ;;  %v18_v41 = vld [vmem:[%s858_s1] sm:$0xff]  ;;  %v83_v56 = vsub.s32 3, %v29_v38 }
  0x16   :  { %589 = vmatprep.subr.bf16.mxu1 %v588_v60  ;;  %v600_v31 = vpack.c.bf16 %v304_v26, %v303_v25  ;;  %v256_v32 = vld [vmem:[%s857_s3 + $0x78] sm:$0xff]  ;;  %v287_v33 = vld [vmem:[%s857_s3 + $0x170] sm:$0xff]  ;;  %v19_v42 = vld [vmem:[%s858_s1 + $0x8] sm:$0xff]  ;;  %v31_v44 = vrot.slane %v18_v41, %v30_v39  ;;  %v35_v45 = vrot.slane %v18_v41, %v34_v40  ;;  %v148_v49 = vrot.slane %v18_v41, %v79_v43 }
  0x17   :  { %v288_v34 = vld [vmem:[%s857_s3 + $0x178] sm:$0xff]  ;;  %v570_v35 = vpack.c.bf16 %v256_v32, %v255_v29  ;;  %v39_v46 = vrot.slane %v19_v42, %v30_v39  ;;  %v43_v47 = vrot.slane %v19_v42, %v34_v40  ;;  %v156_v50 = vrot.slane %v19_v42, %v79_v43  ;;  %v20_v51 = vld [vmem:[%s859_s2] sm:$0xf] }
  0x18   :  { %559 = vmatpush3.bf16.msra.mxu0 %v558_v3  ;;  %v602_v36 = vpack.c.bf16 %v288_v34, %v287_v33  ;;  %v51_v54 = vrot.slane %v31_v44, %v30_v39  ;;  %v55_v55 = vrot.slane %v35_v45, %v30_v39  ;;  %v152_v60 = vrot.slane %v18_v41, %v151_v48 }
  0x19   :  { %591 = vmatpush3.bf16.msra.mxu1 %v590_v4  ;;  %561 = vmatprep.subr.bf16.mxu0 %v560_v7  ;;  %v59_v58 = vrot.slane %v39_v46, %v30_v39  ;;  %v63_v59 = vrot.slane %v43_v47, %v30_v39  ;;  %v160_v61 = vrot.slane %v19_v42, %v151_v48 }
  0x1a   :  { %593 = vmatprep.subr.bf16.mxu1 %v592_v8  ;;  %v168_v62 = vrot.slane %v148_v49, %v79_v43  ;;  %v176_v63 = vrot.slane %v156_v50, %v79_v43  ;;  %v72_v0 = vrot.slane %v20_v51, %v30_v39  ;;  %v80_v1 = vrot.slane %v20_v51, %v79_v43 }
  0x1b   :  { %v100_v2 = vrot.slane %v18_v41, %v75_v52  ;;  %v104_v3 = vrot.slane %v18_v41, %v103_v53  ;;  %v108_v4 = vrot.slane %v19_v42, %v75_v52  ;;  %v112_v5 = vrot.slane %v19_v42, %v103_v53 }
  0x1c   :  { %563 = vmatpush3.bf16.msra.mxu0 %v562_v15  ;;  %v196_v6 = vrot.slane %v18_v41, %v83_v56  ;;  %v204_v7 = vrot.slane %v19_v42, %v83_v56  ;;  %v200_v8 = vrot.slane %v18_v41, %v199_v57  ;;  %v208_v9 = vrot.slane %v19_v42, %v199_v57 }
  0x1d   :  { %595 = vmatpush3.bf16.msra.mxu1 %v594_v16  ;;  %565 = vmatprep.subr.bf16.mxu0 %v564_v19  ;;  %v76_v12 = vrot.slane %v20_v51, %v75_v52  ;;  %v172_v13 = vrot.slane %v152_v60, %v79_v43  ;;  %v84_v14 = vrot.slane %v20_v51, %v83_v56 }
  0x1e   :  { %597 = vmatprep.subr.bf16.mxu1 %v596_v20  ;;  %v180_v15 = vrot.slane %v160_v61, %v79_v43  ;;  %v120_v20 = vrot.slane %v100_v2, %v75_v52  ;;  %v124_v21 = vrot.slane %v104_v3, %v75_v52  ;;  %v128_v22 = vrot.slane %v108_v4, %v75_v52 }
  0x1f   :  { %v132_v23 = vrot.slane %v112_v5, %v75_v52  ;;  %v216_v24 = vrot.slane %v196_v6, %v83_v56  ;;  %v224_v25 = vrot.slane %v204_v7, %v83_v56  ;;  %v220_v26 = vrot.slane %v200_v8, %v83_v56 }
  0x20   :  { %567 = vmatpush3.bf16.msra.mxu0 %v566_v27  ;;  %v228_v27 = vrot.slane %v208_v9, %v83_v56 }
  0x21   :  { %599 = vmatpush3.bf16.msra.mxu1 %v598_v28  ;;  %569 = vmatprep.subr.bf16.mxu0 %v568_v30 }
  0x22   :  { %601 = vmatprep.subr.bf16.mxu1 %v600_v31 }
  0x24   :  { %571 = vmatpush3.bf16.msra.mxu0 %v570_v35 }
  0x25   :  { %603 = vmatpush3.bf16.msra.mxu1 %v602_v36 }
  0x81   :  { %v24_v10 = vpop.permute.xlu0 %23  ;;  %v143_v11 = vpop.permute.xlu1 %142 }
  0x82   :  { %v64_v16 = vmul.f32 %v51_v54, %v24_v10  ;;  %v65_v17 = vmul.f32 %v55_v55, %v24_v10  ;;  %v66_v18 = vmul.f32 %v59_v58, %v24_v10  ;;  %v67_v19 = vmul.f32 %v63_v59, %v24_v10 }
  0x83   :  { %v181_v28 = vmul.f32 %v168_v62, %v143_v11  ;;  %v183_v29 = vmul.f32 %v176_v63, %v143_v11  ;;  %v182_v30 = vmul.f32 %v172_v13, %v143_v11  ;;  %v184_v31 = vmul.f32 %v180_v15, %v143_v11 }
  0x84   :  { %v89_v32 = vadd.f32 %v72_v0, %v64_v16  ;;  %v91_v33 = vadd.f32 %v80_v1, %v66_v18  ;;  %v90_v36 = vadd.f32 %v76_v12, %v65_v17  ;;  %v92_v37 = vadd.f32 %v84_v14, %v67_v19 }
  0x86   :  { %v95_v34 = vpop.permute.xlu0 %94 }
  0x87   :  { %v191_v35 = vpop.permute.xlu1 %190  ;;  %v133_v38 = vmul.f32 %v120_v20, %v95_v34  ;;  %v134_v39 = vmul.f32 %v124_v21, %v95_v34  ;;  %v135_v40 = vmul.f32 %v128_v22, %v95_v34  ;;  %v136_v41 = vmul.f32 %v132_v23, %v95_v34 }
  0x88   :  { %v229_v42 = vmul.f32 %v216_v24, %v191_v35  ;;  %v231_v43 = vmul.f32 %v224_v25, %v191_v35  ;;  %v230_v44 = vmul.f32 %v220_v26, %v191_v35  ;;  %v232_v45 = vmul.f32 %v228_v27, %v191_v35 }
  0x89   :  { %v137_v46 = vadd.f32 %v133_v38, %v89_v32  ;;  %v139_v47 = vadd.f32 %v135_v40, %v91_v33  ;;  %v138_v48 = vadd.f32 %v134_v39, %v90_v36  ;;  %v140_v49 = vadd.f32 %v136_v41, %v92_v37 }
  0x8b   :  { %v186_v50 = vadd.f32 %v182_v30, %v138_v48  ;;  %v188_v51 = vadd.f32 %v184_v31, %v140_v49  ;;  %v185_v52 = vadd.f32 %v181_v28, %v137_v46  ;;  %v187_v53 = vadd.f32 %v183_v29, %v139_v47 }
  0x8d   :  { %v234_v54 = vadd.f32 %v230_v44, %v186_v50  ;;  %v236_v55 = vadd.f32 %v232_v45, %v188_v51  ;;  %v233_v56 = vadd.f32 %v229_v42, %v185_v52  ;;  %v235_v57 = vadd.f32 %v231_v43, %v187_v53 }
  0x8f   :  { %v238_v58 = vmax.f32 %v234_v54, 0.0  ;;  %v240_v59 = vmax.f32 %v236_v55, 0.0  ;;  %v237_v60 = vmax.f32 %v233_v56, 0.0  ;;  %v239_v61 = vmax.f32 %v235_v57, 0.0 }
  0x91   :  { %369 = vmatprep.mubr.f32.mxu0 %v238_v58  ;;  %439 = vmatprep.mubr.f32.mxu1 %v240_v59 }
  0x92   :  { %370 = vmatmul.mubr.f32.vlgmr.msra.gmra.mrb[0].mxu0 %v237_v60  ;;  %440 = vmatmul.mubr.f32.vlgmr.msra.gmra.mrb[0].mxu1 %v239_v61 }
 0x165   :  { %v502_v62 = vpop.f32.mrb[0].mxu0  ;;  %v537_v63 = vpop.f32.mrb[0].mxu1 }
 0x166   :  { %v503_v0 = vpop.f32.mrb[1].mxu0  ;;  %v538_v1 = vpop.f32.mrb[1].mxu1 }
 0x167   :  { %v504_v2 = vadd.f32 %v503_v0, %v502_v62  ;;  %v539_v3 = vadd.f32 %v538_v1, %v537_v63 }
 0x169   :  { %v442_v4 = vadd.f32 %v539_v3, %v504_v2 }
 0x16b   :  { %v446_v5 = vsel %vm445_vm0, %v442_v4, -inf }
 0x16c   :  { %v447_v6 = vrot.slane %v446_v5, 4 }
 0x16e   :  { %v448_v7 = vmax.f32 %v446_v5, %v447_v6 }
 0x170   :  { %v449_v8 = vrot.slane %v448_v7, 2 }
 0x172   :  { %v450_v9 = vmax.f32 %v448_v7, %v449_v8 }
 0x174   :  { %v451_v10 = vrot.slane %v450_v9, 1 }
 0x176   :  { %v452_v11 = vmax.f32 %v450_v9, %v451_v10 }
 0x178   :  { %v453_v12 = vsub.f32 %v442_v4, %v452_v11 }
 0x17a   :  { %v454_v13 = vmul.f32 1.442695, %v453_v12 }
 0x17c   :  { %613 = vpow2.f32 %v454_v13 }
 0x186   :  { %v614_v14 = vpop.eup %613 }
 0x187   :  { %v456_v15 = vsel %vm445_vm0, %v614_v14, 0.0 }
 0x188   :  { %v457_v16 = vrot.slane %v456_v15, 4 }
 0x18a   :  { %v458_v17 = vadd.f32 %v457_v16, %v456_v15 }
 0x18c   :  { %v459_v18 = vrot.slane %v458_v17, 2 }
 0x18e   :  { %v460_v19 = vadd.f32 %v459_v18, %v458_v17 }
 0x190   :  { %v461_v20 = vrot.slane %v460_v19, 1 }
 0x192   :  { %v462_v21 = vadd.f32 %v461_v20, %v460_v19 }
 0x194   :  { %615 = vrcp.f32 %v462_v21 }
 0x19e   :  { %v616_v22 = vpop.eup %615 }
 0x19f   :  { %v464_v23 = vmul.f32 %v616_v22, %v614_v14 }
 0x1a1   :  { %465 = vst.msk [vmem:[%s860_s4] sm:$0xff] %vm445_vm0, %v464_v23 }

</bundles_post_ra>
